<compile_context>
chip_gen: v6e
topology: v6e:2x2x1
jax: 0.10.0
libtpu: 0.0.40
codegen_flags: <defaults>
</compile_context>

<pallas_src>
import functools

import jax
import jax.numpy as jnp
from jax.experimental import pallas as pl
from jax.experimental.pallas import tpu as pltpu

FP8_MAX = 448.0    # torch.finfo(torch.float8_e4m3fn).max
FP8_MIN = -448.0   # torch.finfo(torch.float8_e4m3fn).min
EPS = 1e-12        # amax.clamp(min=1e-12)

# Per-kernel VMEM budget: comfortably under the v7x 64 MiB physical ceiling,
# well above the 16 MiB (v5e) / 32 MiB (v6e/v7x) default scoped limits.
VMEM_LIMIT_BYTES = 48 * 1024 * 1024


def _round_up(a, b):
    return ((a + b - 1) // b) * b


# ----------------------------- Pass 1: amax -------------------------------- #

def _amax_kernel(x_ref, amax_ref, *, m, k, tm, tk):
    """Per-block partial |x| max (native dtype in HBM, masked ragged tails)."""
    a = jnp.abs(x_ref[...].astype(jnp.float32))
    if (m % tm != 0) or (k % tk != 0):
        # Ragged tail block: the padded part of the VMEM tile is undefined —
        # mask it instead of jnp.pad-copying x in HBM.
        rows = jax.lax.broadcasted_iota(jnp.int32, a.shape, 0) + pl.program_id(0) * tm
        cols = jax.lax.broadcasted_iota(jnp.int32, a.shape, 1) + pl.program_id(1) * tk
        a = jnp.where((rows < m) & (cols < k), a, 0.0)
    amax_ref[0, 0] = jnp.max(a)


# ------------------- Pass 2: quantize + matmul + epilogue ------------------ #

def _quant_matmul_kernel(scales_ref, x_ref, w_ref, bias_ref, o_ref,
                         qx_ref, acc_ref, *, k_valid, tk, mxu_dtype):
    j = pl.program_id(1)          # N tile  (arbitrary)
    k = pl.program_id(2)          # K tile  (arbitrary, innermost)

    # Quantize this (tm, tk) activation chunk exactly once per row block and
    # cache it; every j > 0 reuses the cached strip, so the ~6-op quant chain
    # no longer scales with the number of N tiles.
    @pl.when(j == 0)
    def _():
        qf = x_ref[...].astype(jnp.float32) * scales_ref[0]   # FP8_MAX / amax
        qf = jnp.clip(qf, FP8_MIN, FP8_MAX)
        if k_valid % tk != 0:
            cols = jax.lax.broadcasted_iota(jnp.int32, qf.shape, 1) + k * tk
            qf = jnp.where(cols < k_valid, qf, 0.0)           # zero ragged-K tail
        qx_ref[k] = qf.astype(jnp.float8_e4m3fn).astype(mxu_dtype)

    @pl.when(k == 0)
    def _():
        acc_ref[...] = jnp.zeros_like(acc_ref)

    a = qx_ref[k]                            # (tm, tk) fp8-rounded operand
    b = w_ref[...].astype(mxu_dtype)         # (tk, tn); exact cast for e4m3
    acc_ref[...] += jnp.dot(a, b, preferred_element_type=jnp.float32)

    @pl.when(k == pl.num_programs(2) - 1)
    def _():
        # Fold act_scale * weight_scale into the f32 epilogue, add bias, cast.
        o_ref[...] = (acc_ref[...] * scales_ref[1] + bias_ref[...]).astype(o_ref.dtype)


# ----------------------- One-time parameter preparation -------------------- #

def prepare_fp8_linear_params(qweight, weight_scale, bias, *, tn=256, tk=512):
    """Static-parameter prep (run once, not per forward call): transpose the
    fp8 weight to [K, N] (lane-dense on N, no per-tile XLU transpose in the
    kernel) and zero-pad K/N up to the tile grid; bias as an f32 row."""
    n_out, k_in = qweight.shape
    ws = jnp.asarray(weight_scale, jnp.float32)
    assert ws.size == 1, "per-tensor weight_scale expected (0-d / 1-element)"
    ws = ws.reshape(())

    tn_eff = n_out if n_out <= tn else tn
    tk_eff = k_in if k_in <= tk else tk
    np_pad = _round_up(n_out, tn_eff)
    kp_pad = _round_up(k_in, tk_eff)

    wt = jnp.transpose(qweight)                                   # [K, N] fp8
    if (kp_pad, np_pad) != (k_in, n_out):
        wt = jnp.pad(wt, ((0, kp_pad - k_in), (0, np_pad - n_out)))
    bias_row = jnp.asarray(bias, jnp.float32).reshape(1, n_out)
    if np_pad != n_out:
        bias_row = jnp.pad(bias_row, ((0, 0), (0, np_pad - n_out)))
    return wt, ws, bias_row, n_out


# --------------------------------- Forward --------------------------------- #

@functools.partial(jax.jit,
                   static_argnames=("n_out", "tm", "tn", "tk", "native_fp8"))
def fp8_static_linear_quantizer(x, wt, weight_scale, bias_row, *,
                                n_out, tm=512, tn=256, tk=512,
                                native_fp8=False):
    """Forward of FP8StaticLinearQuantizer (first call: act_scale derives from
    this input).  Returns (output [M, n_out] in x.dtype, act_scale)."""
    M, K = x.shape
    Kp, Np = wt.shape
    out_dtype = x.dtype

    tm_eff = M if M <= tm else tm
    tn_eff = n_out if n_out <= tn else tn
    tk_eff = K if K <= tk else tk
    assert Np == _round_up(n_out, tn_eff) and Kp == _round_up(K, tk_eff), (
        "weights must be prepared with matching (tn, tk)")

    gm = pl.cdiv(M, tm_eff)
    gn = Np // tn_eff
    gk = Kp // tk_eff

    # ---- Pass 1: 2-D tiled partial |x| maxima (no pad copy of x) ---------- #
    tma = M if M <= 256 else 256
    tka = K if K <= 512 else 512
    gma, gka = pl.cdiv(M, tma), pl.cdiv(K, tka)
    partial_amax = pl.pallas_call(
        functools.partial(_amax_kernel, m=M, k=K, tm=tma, tk=tka),
        out_shape=jax.ShapeDtypeStruct((gma, gka), jnp.float32),
        grid=(gma, gka),
        in_specs=[pl.BlockSpec((tma, tka), lambda i, j: (i, j))],
        out_specs=pl.BlockSpec((1, 1), lambda i, j: (i, j),
                               memory_space=pltpu.MemorySpace.SMEM),
        compiler_params=pltpu.CompilerParams(
            dimension_semantics=("parallel", "parallel")),
    )(x)

    amax = jnp.max(partial_amax)
    quant_scale = FP8_MAX / jnp.maximum(amax, EPS)    # multiply x by this
    act_scale = 1.0 / quant_scale                     # what the module stores
    dequant_scale = act_scale * weight_scale          # folded epilogue scale
    scales = jnp.stack([quant_scale, dequant_scale]).astype(jnp.float32)

    # ---- Pass 2: quantize once per row block + K-tiled MXU matmul --------- #
    mxu_dtype = jnp.float8_e4m3fn if native_fp8 else jnp.bfloat16
    kernel = functools.partial(_quant_matmul_kernel, k_valid=K, tk=tk_eff,
                               mxu_dtype=mxu_dtype)
    out = pl.pallas_call(
        kernel,
        out_shape=jax.ShapeDtypeStruct((M, n_out), out_dtype),
        grid=(gm, gn, gk),
        in_specs=[
            pl.BlockSpec(memory_space=pltpu.MemorySpace.SMEM),   # scales (2,)
            # x chunk (i, k) is only consumed while j == 0 (to fill the qx
            # scratch); keep the block index constant for j > 0 so raw x is
            # not re-streamed from HBM for every N tile.
            pl.BlockSpec((tm_eff, tk_eff),
                         lambda i, j, k: (i, k * (1 - jnp.minimum(j, 1)))),
            pl.BlockSpec((tk_eff, tn_eff), lambda i, j, k: (k, j)),  # [K,N] w
            pl.BlockSpec((1, tn_eff), lambda i, j, k: (0, j)),       # bias
        ],
        out_specs=pl.BlockSpec((tm_eff, tn_eff), lambda i, j, k: (i, j)),
        scratch_shapes=[
            pltpu.VMEM((gk, tm_eff, tk_eff), mxu_dtype),  # quantized x strip
            pltpu.VMEM((tm_eff, tn_eff), jnp.float32),    # f32 accumulator
        ],
        compiler_params=pltpu.CompilerParams(
            dimension_semantics=("parallel", "arbitrary", "arbitrary"),
            vmem_limit_bytes=VMEM_LIMIT_BYTES),
    )(scales, x, wt, bias_row)

    return out, act_scale


# --------------------------- setup / reference ----------------------------- #

def per_tensor_quantize_jax(t):
    """Plain-JAX replica of per_tensor_quantize (weight setup only)."""
    # TODO(synk): numel()==0 special case of per_tensor_quantize not handled.
    amax = jnp.max(jnp.abs(t))
    scale = FP8_MAX / jnp.maximum(amax, EPS)
    q = jnp.clip(t * scale, FP8_MIN, FP8_MAX).astype(jnp.float8_e4m3fn)
    return q, (1.0 / scale).astype(jnp.float32)


def _reference(x, qweight, weight_scale, bias):
    amax = jnp.max(jnp.abs(x))
    scale = FP8_MAX / jnp.maximum(amax, EPS)
    act_scale = 1.0 / scale
    qx = jnp.clip(x * scale, FP8_MIN, FP8_MAX).astype(jnp.float8_e4m3fn)
    a = qx.astype(jnp.float32) * act_scale
    b = qweight.astype(jnp.float32) * weight_scale
    return (a @ b.T + bias).astype(x.dtype)


if __name__ == "__main__":
    key = jax.random.PRNGKey(0)
    kw, kb, kx = jax.random.split(key, 3)
    # batch=2, seq=8 -> M=16 rows; in_features=32; out_features=32
    M, K, N = 16, 32, 32
    w_fp32 = jax.random.normal(kw, (N, K), jnp.float32)
    bias = jax.random.normal(kb, (N,), jnp.float32)
    x = jax.random.normal(kx, (M, K), jnp.float32)

    # Module __init__ arguments: already-quantized weight + its per-tensor scale.
    qweight, weight_scale = per_tensor_quantize_jax(w_fp32)

    # One-time static-parameter prep (transpose to [K, N], pad, f32 bias row).
    wt, ws, bias_row, n_out = prepare_fp8_linear_params(qweight, weight_scale, bias)

    out, act_scale = fp8_static_linear_quantizer(x, wt, ws, bias_row, n_out=n_out)
    jax.block_until_ready((out, act_scale))

    ref = _reference(x, qweight, weight_scale, bias)
    assert out.shape == (M, N) and out.dtype == x.dtype
    assert jnp.allclose(out, ref, rtol=1e-2, atol=1e-2)
    print("KERNEL_OK")
</pallas_src>

<mosaic_0001>
module attributes {stable_mosaic.version = 11 : i64} {
  func.func @_quant_matmul_kernel(%arg0: i32, %arg1: i32, %arg2: i32, %arg3: memref<2xf32, #tpu.memory_space<smem>>, %arg4: memref<16x32xf32, #tpu.memory_space<vmem>>, %arg5: memref<32x32xf8E4M3FN, #tpu.memory_space<vmem>>, %arg6: memref<1x32xf32, #tpu.memory_space<vmem>>, %arg7: memref<16x32xf32, #tpu.memory_space<vmem>>, %arg8: memref<1x16x32xbf16, #tpu.memory_space<vmem>>, %arg9: memref<16x32xf32, #tpu.memory_space<vmem>>) attributes {dimension_semantics = [#tpu.dimension_semantics<parallel>, #tpu.dimension_semantics<arbitrary>, #tpu.dimension_semantics<arbitrary>], iteration_bounds = array<i64: 1, 1, 1>, scalar_prefetch = 0 : i64, scratch_operands = 2 : i64, tpu.core_type = #tpu.core_type<tc>, window_params = [{transform_indices = @transform_0, window_bounds = array<i64: 2>}, {transform_indices = @transform_1, window_bounds = array<i64: 16, 32>}, {transform_indices = @transform_2, window_bounds = array<i64: 32, 32>}, {transform_indices = @transform_3, window_bounds = array<i64: 1, 32>}, {transform_indices = @transform_4, window_bounds = array<i64: 16, 32>}]} {
    %c0_i32 = arith.constant 0 : i32
    %0 = arith.cmpi eq, %arg1, %c0_i32 : i32
    %1 = arith.extui %0 : i1 to i32
    %c0_i32_0 = arith.constant 0 : i32
    %2 = arith.cmpi ne, %1, %c0_i32_0 : i32
    scf.if %2 {
      %c0_12 = arith.constant 0 : index
      %c0_13 = arith.constant 0 : index
      %18 = vector.load %arg4[%c0_12, %c0_13] : memref<16x32xf32, #tpu.memory_space<vmem>>, vector<16x32xf32>
      %c0_14 = arith.constant 0 : index
      %19 = memref.load %arg3[%c0_14] : memref<2xf32, #tpu.memory_space<smem>>
      %20 = vector.broadcast %19 : f32 to vector<16x32xf32>
      %21 = arith.mulf %18, %20 : vector<16x32xf32>
      %cst_15 = arith.constant -4.480000e+02 : f32
      %cst_16 = arith.constant 4.480000e+02 : f32
      %22 = vector.broadcast %cst_15 : f32 to vector<16x32xf32>
      %23 = arith.maximumf %22, %21 : vector<16x32xf32>
      %24 = vector.broadcast %cst_16 : f32 to vector<16x32xf32>
      %25 = arith.minimumf %24, %23 : vector<16x32xf32>
      %26 = arith.truncf %25 : vector<16x32xf32> to vector<16x32xf8E4M3FN>
      %27 = arith.extf %26 : vector<16x32xf8E4M3FN> to vector<16x32xbf16>
      %28 = arith.index_cast %arg2 : i32 to index
      %c0_17 = arith.constant 0 : index
      %c0_18 = arith.constant 0 : index
      %29 = vector.load %arg8[%28, %c0_17, %c0_18] : memref<1x16x32xbf16, #tpu.memory_space<vmem>>, vector<1x16x32xbf16>
      %30 = vector.shape_cast %29 : vector<1x16x32xbf16> to vector<16x32xbf16>
      %31 = vector.shape_cast %27 : vector<16x32xbf16> to vector<1x16x32xbf16>
      tpu.vector_store %arg8[%28, %c0_17, %c0_18], %31 {strides = array<i32>} : memref<1x16x32xbf16, #tpu.memory_space<vmem>>, vector<1x16x32xbf16>,
    } else {
    }
    %c0_i32_1 = arith.constant 0 : i32
    %3 = arith.cmpi eq, %arg2, %c0_i32_1 : i32
    %4 = arith.extui %3 : i1 to i32
    %c0_i32_2 = arith.constant 0 : i32
    %5 = arith.cmpi ne, %4, %c0_i32_2 : i32
    scf.if %5 {
      %cst_12 = arith.constant 0.000000e+00 : f32
      %18 = vector.broadcast %cst_12 : f32 to vector<16x32xf32>
      %c0_13 = arith.constant 0 : index
      %c0_14 = arith.constant 0 : index
      %19 = vector.load %arg9[%c0_13, %c0_14] : memref<16x32xf32, #tpu.memory_space<vmem>>, vector<16x32xf32>
      tpu.vector_store %arg9[%c0_13, %c0_14], %18 {strides = array<i32>} : memref<16x32xf32, #tpu.memory_space<vmem>>, vector<16x32xf32>,
    } else {
    }
    %6 = arith.index_cast %arg2 : i32 to index
    %c0 = arith.constant 0 : index
    %c0_3 = arith.constant 0 : index
    %7 = vector.load %arg8[%6, %c0, %c0_3] : memref<1x16x32xbf16, #tpu.memory_space<vmem>>, vector<1x16x32xbf16>
    %8 = vector.shape_cast %7 : vector<1x16x32xbf16> to vector<16x32xbf16>
    %c0_4 = arith.constant 0 : index
    %c0_5 = arith.constant 0 : index
    %9 = vector.load %arg5[%c0_4, %c0_5] : memref<32x32xf8E4M3FN, #tpu.memory_space<vmem>>, vector<32x32xf8E4M3FN>
    %10 = arith.extf %9 : vector<32x32xf8E4M3FN> to vector<32x32xbf16>
    %c0_6 = arith.constant 0 : index
    %c0_7 = arith.constant 0 : index
    %11 = vector.load %arg9[%c0_6, %c0_7] : memref<16x32xf32, #tpu.memory_space<vmem>>, vector<16x32xf32>
    %cst = arith.constant dense<0.000000e+00> : vector<16x32xf32>
    %12 = tpu.matmul %8, %10, %cst {dimension_numbers = #tpu.dot_dimension_numbers<[1], [0], [0], [1], [0, 0, 1, 1], [], []>} : vector<16x32xbf16>, vector<32x32xbf16>, vector<16x32xf32> -> vector<16x32xf32>
    %13 = arith.addf %11, %12 : vector<16x32xf32>
    %c0_8 = arith.constant 0 : index
    %c0_9 = arith.constant 0 : index
    %14 = vector.load %arg9[%c0_8, %c0_9] : memref<16x32xf32, #tpu.memory_space<vmem>>, vector<16x32xf32>
    tpu.vector_store %arg9[%c0_8, %c0_9], %13 {strides = array<i32>} : memref<16x32xf32, #tpu.memory_space<vmem>>, vector<16x32xf32>,
    %c0_i32_10 = arith.constant 0 : i32
    %15 = arith.cmpi eq, %arg2, %c0_i32_10 : i32
    %16 = arith.extui %15 : i1 to i32
    %c0_i32_11 = arith.constant 0 : i32
    %17 = arith.cmpi ne, %16, %c0_i32_11 : i32
    scf.if %17 {
      %c0_12 = arith.constant 0 : index
      %c0_13 = arith.constant 0 : index
      %18 = vector.load %arg9[%c0_12, %c0_13] : memref<16x32xf32, #tpu.memory_space<vmem>>, vector<16x32xf32>
      %c1 = arith.constant 1 : index
      %19 = memref.load %arg3[%c1] : memref<2xf32, #tpu.memory_space<smem>>
      %20 = vector.broadcast %19 : f32 to vector<16x32xf32>
      %21 = arith.mulf %18, %20 : vector<16x32xf32>
      %c0_14 = arith.constant 0 : index
      %c0_15 = arith.constant 0 : index
      %22 = vector.load %arg6[%c0_14, %c0_15] : memref<1x32xf32, #tpu.memory_space<vmem>>, vector<1x32xf32>
      %23 = vector.broadcast %22 : vector<1x32xf32> to vector<16x32xf32>
      %24 = arith.addf %21, %23 : vector<16x32xf32>
      %c0_16 = arith.constant 0 : index
      %c0_17 = arith.constant 0 : index
      %25 = vector.load %arg7[%c0_16, %c0_17] : memref<16x32xf32, #tpu.memory_space<vmem>>, vector<16x32xf32>
      tpu.vector_store %arg7[%c0_16, %c0_17], %24 {strides = array<i32>} : memref<16x32xf32, #tpu.memory_space<vmem>>, vector<16x32xf32>,
    } else {
    }
    return
  }
  func.func @transform_0(%arg0: i32, %arg1: i32, %arg2: i32) -> i32 {
    %c0_i32 = arith.constant 0 : i32
    %c0_i32_0 = arith.constant 0 : i32
    return %c0_i32 : i32
  }
  func.func @transform_1(%arg0: i32, %arg1: i32, %arg2: i32) -> (i32, i32) {
    %c1_i32 = arith.constant 1 : i32
    %0 = arith.minsi %arg1, %c1_i32 : i32
    %c1_i32_0 = arith.constant 1 : i32
    %1 = arith.subi %c1_i32_0, %0 : i32
    %2 = arith.muli %arg2, %1 : i32
    %c0_i32 = arith.constant 0 : i32
    return %arg0, %2 : i32, i32
  }
  func.func @transform_2(%arg0: i32, %arg1: i32, %arg2: i32) -> (i32, i32) {
    %c0_i32 = arith.constant 0 : i32
    return %arg2, %arg1 : i32, i32
  }
  func.func @transform_3(%arg0: i32, %arg1: i32, %arg2: i32) -> (i32, i32) {
    %c0_i32 = arith.constant 0 : i32
    %c0_i32_0 = arith.constant 0 : i32
    return %c0_i32, %arg1 : i32, i32
  }
  func.func @transform_4(%arg0: i32, %arg1: i32, %arg2: i32) -> (i32, i32) {
    %c0_i32 = arith.constant 0 : i32
    return %arg0, %arg1 : i32, i32
  }
}

module attributes {stable_mosaic.version = 11 : i64} {
  func.func @_amax_kernel(%arg0: i32, %arg1: i32, %arg2: memref<16x32xf32, #tpu.memory_space<vmem>>, %arg3: memref<1x1xf32, #tpu.memory_space<smem>>) attributes {dimension_semantics = [#tpu.dimension_semantics<parallel>, #tpu.dimension_semantics<parallel>], iteration_bounds = array<i64: 1, 1>, scalar_prefetch = 0 : i64, scratch_operands = 0 : i64, tpu.core_type = #tpu.core_type<tc>, window_params = [{transform_indices = @transform_0, window_bounds = array<i64: 16, 32>}, {transform_indices = @transform_1, window_bounds = array<i64: 1, 1>}]} {
    %c0 = arith.constant 0 : index
    %c0_0 = arith.constant 0 : index
    %0 = vector.load %arg2[%c0, %c0_0] : memref<16x32xf32, #tpu.memory_space<vmem>>, vector<16x32xf32>
    %1 = math.absf %0 : vector<16x32xf32>
    %2 = vector.shape_cast %1 : vector<16x32xf32> to vector<1x16x32xf32>
    %cst = arith.constant dense<0xFF800000> : vector<1xf32>
    %3 = vector.multi_reduction <maximumf>, %2, %cst [1, 2] : vector<1x16x32xf32> to vector<1xf32>
    %4 = vector.shape_cast %3 : vector<1xf32> to vector<1x1x1xf32>
    %5 = vector.extract %4[0, 0, 0] : f32 from vector<1x1x1xf32>
    %c0_1 = arith.constant 0 : index
    %c0_2 = arith.constant 0 : index
    %6 = memref.load %arg3[%c0_1, %c0_2] : memref<1x1xf32, #tpu.memory_space<smem>>
    memref.store %5, %arg3[%c0_1, %c0_2] : memref<1x1xf32, #tpu.memory_space<smem>>
    return
  }
  func.func @transform_0(%arg0: i32, %arg1: i32) -> (i32, i32) {
    %c0_i32 = arith.constant 0 : i32
    return %arg0, %arg1 : i32, i32
  }
  func.func @transform_1(%arg0: i32, %arg1: i32) -> (i32, i32) {
    %c0_i32 = arith.constant 0 : i32
    return %arg0, %arg1 : i32, i32
  }
}

</mosaic_0001>

<bundles_post_ra>
// kernel: fp8_static_linear_quantizer.3
= control target key start
LH: loop header
LB: loop body
LE: loop exit
PB: predicated region body
PF: predicated region fallthrough
CT: control target
= control target key end

     0   :  { %9 = vsyncpa [#allocation6], 0  ;;  %s558_s0 = inlined_call_operand.vmem [shape: f32[2], index: 0, kind: input, shape index: {}]   ;;  %s559_s1 = inlined_call_operand.vmem [shape: f32[16,32], index: 1, kind: input, shape index: {}]   ;;  %s560_s2 = inlined_call_operand.vmem [shape: f8e4m3fn[32,32], index: 2, kind: input, shape index: {}]   ;;  %s561_s3 = inlined_call_operand.vmem [shape: f32[1,32], index: 3, kind: input, shape index: {}]   ;;  %s562_s4 = inlined_call_operand.hbm [shape: f32[16,32], index: 4, kind: output, shape index: {}]  }
   0x1   :  { %10 = vsyncpa [#allocation5], 0  ;;  %s17_s17 = sshll.u32 %s558_s0, 4  ;;  %s18_s17 = int_to_ptr.vmem [resolvable:$true] %s17_s17 }
   0x2   :  { %s454_s18 = scalar_lea.vmem %s18_s17, 16  ;;  %p459_p1 = scmp.lt.s32.totalorder %s18_s17, %s18_s17 }
   0x3   :  { %p455_p0 = scmp.ne.s32.totalorder %s18_s17, %s454_s18  ;;  %p460_p2 = scmp.lt.s32.totalorder %s454_s18, %s454_s18 }
   0x5   :  { %p461_p3 = por %p460_p2, %p459_p1 }
   0x7   :  { %p462_p4 = pnand %p461_p3, %p455_p0 }
   0x9   :  { %465 = shalt.err (!%p462_p4)
}
   0xa   :  { %s490_s19 = smov [#allocation4]  }
   0xb   :  { %20 = dma.vmem_to_smem %s18_s17, 16, %s490_s19, [#allocation6]  }
   0xc   :  { %486 = dma.done.wait [#allocation6], 16  }
   0xd   :  { %487 = vsyncadd [#allocation6], 4294967280 }
   0xe   :  { %38 = sfence }
   0xf   :  { %s60_s20 = sld [smem:[#allocation4]]  ;;  %v58_v0 = vld [vmem:[%s559_s1] sm:$0xff]  ;;  %v59_v1 = vld [vmem:[%s559_s1 + $0x8] sm:$0xff] }
  0x15   :  { %v61_v2 = vstv %s60_s20 }
  0x16   :  { %v62_v3 = vmul.f32 %v61_v2, %v58_v0  ;;  %v63_v4 = vmul.f32 %v61_v2, %v59_v1 }
  0x18   :  { %v425_v5 = vclamps-f32 %v62_v3, 448.0  ;;  %v426_v6 = vclamps-f32 %v63_v4, 448.0 }
  0x1a   :  { %v68_v7 = vand.u32 2147483647, %v425_v5  ;;  %v74_v8 = vshrl.u32 %v425_v5, 20  ;;  %v89_v9 = vand.u32 2147483647, %v426_v6  ;;  %v95_v10 = vshrl.u32 %v426_v6, 20 }
  0x1b   :  { %v69_v14 = vand.u32 2147483648, %v425_v5  ;;  %v90_v20 = vand.u32 2147483648, %v426_v6  ;;  %vm83_vm2 = vcmp.ne.f32.partialorder %v425_v5, %v425_v5  ;;  %vm104_vm5 = vcmp.ne.f32.partialorder %v426_v6, %v426_v6 }
  0x1c   :  { %v71_v11 = vadd.f32 1182793728, %v68_v7  ;;  %v75_v12 = vand.u32 1, %v74_v8  ;;  %v76_v13 = vadd.s32 3288858623, %v68_v7  ;;  %v92_v15 = vadd.f32 1182793728, %v89_v9 }
  0x1d   :  { %v96_v16 = vand.u32 1, %v95_v10  ;;  %v97_v19 = vadd.s32 3288858623, %v89_v9  ;;  %vm79_vm0 = vcmp.lt.s32.totalorder %v68_v7, 1015021568  ;;  %vm81_vm1 = vcmp.ge.s32.totalorder %v68_v7, 1139277825 }
  0x1e   :  { %v427_v17 = vadd.s32 3112173568, %v71_v11  ;;  %v77_v18 = vadd.s32 %v76_v13, %v75_v12  ;;  %v428_v22 = vadd.s32 3112173568, %v92_v15  ;;  %v85_v24 = vshrl.u32 %v69_v14, 24 }
  0x1f   :  { %v98_v23 = vadd.s32 %v97_v19, %v96_v16  ;;  %vm100_vm3 = vcmp.lt.s32.totalorder %v89_v9, 1015021568  ;;  %vm102_vm4 = vcmp.ge.s32.totalorder %v89_v9, 1139277825  ;;  %v106_v28 = vshrl.u32 %v90_v20, 24 }
  0x20   :  { %v78_v21 = vshrl.u32 %v77_v18, 20 }
  0x21   :  { %v99_v26 = vshrl.u32 %v98_v23, 20 }
  0x22   :  { %v80_v25 = vsel %vm79_vm0, %v427_v17, %v78_v21 }
  0x23   :  { %v82_v27 = vsel %vm81_vm1, 127, %v80_v25  ;;  %v101_v30 = vsel %vm100_vm3, %v428_v22, %v99_v26 }
  0x24   :  { %v84_v29 = vsel %vm83_vm2, 127, %v82_v27  ;;  %v103_v32 = vsel %vm102_vm4, 127, %v101_v30 }
  0x25   :  { %v86_v31 = vor.u32 %v85_v24, %v84_v29  ;;  %v105_v33 = vsel %vm104_vm5, 127, %v103_v32 }
  0x26   :  { %v107_v35 = vor.u32 %v106_v28, %v105_v33 }
  0x27   :  { %v87_v34 = vor.u32 4294967040, %v86_v31 }
  0x28   :  { %v108_v36 = vor.u32 4294967040, %v107_v35 }
  0x2a   :  { %v110_v37 = vpack.c.b16 %v108_v36, %v87_v34 }
  0x2c   :  { %v111_v38 = vpack.c.b8 %v110_v37, %v110_v37 }
  0x2e   :  { %113 = vst [vmem:[#allocation8] sm:$0xff] %v111_v38 }
  0x35   :  { %v114_v39 = vld [vmem:[#allocation8] sm:$0x3] }
  0x36   :  { %v115_v40 = vunpack.c.0.f8e4m3b11 %v114_v39 }
  0x38   :  { %v119_v41 = vand.u32 2147483647, %v115_v40  ;;  %vm121_vm6 = vcmp.ne.f32.partialorder %v115_v40, %v115_v40  ;;  %v122_v42 = vmul.f32 16.0, %v115_v40 }
  0x3a   :  { %vm120_vm7 = vcmp.gt.f32.partialorder %v119_v41, 29.0  ;;  %v123_v43 = vsel %vm121_vm6, -0.0, %v122_v42 }
  0x3b   :  { %v124_v44 = vsel %vm120_vm7, nan, %v123_v43 }
  0x3c   :  { %143 = vst [vmem:[#allocation9] sm:$0xff] %v111_v38  ;;  %v435_v51 = vpack.c.bf16 %v124_v44, %v124_v44  ;;  %vm185_vm10 = vcmask 257024   ;;  %vm192_vm11 = vcmask 261120   ;;  %v200_v53 = vld [vmem:[%s560_s2] sm:$0xff]  ;;  %v491_v54 = vmov 0.0  }
  0x3d   :  { %193 = vst.msk [vmem:[#allocation3] sm:$0xff] %vm192_vm11, %v491_v54  ;;  %194 = vst.msk [vmem:[#allocation3 + $0x8] sm:$0xff] %vm192_vm11, %v491_v54 }
  0x3e   :  { %186 = vst.msk [vmem:[#allocation2] sm:$0xf] %vm185_vm10, %v435_v51 }
  0x43   :  { %v145_v45 = vld [vmem:[#allocation9 + $0x2] sm:$0x3] }
  0x44   :  { %v146_v46 = vunpack.c.0.f8e4m3b11 %v145_v45 }
  0x45   :  { %v198_v55 = vld [vmem:[#allocation2] sm:$0xf] }
  0x46   :  { %v150_v47 = vand.u32 2147483647, %v146_v46  ;;  %vm152_vm8 = vcmp.ne.f32.partialorder %v146_v46, %v146_v46  ;;  %v153_v48 = vmul.f32 16.0, %v146_v46 }
  0x48   :  { %vm151_vm9 = vcmp.gt.f32.partialorder %v150_v47, 29.0  ;;  %v154_v49 = vsel %vm152_vm8, -0.0, %v153_v48 }
  0x49   :  { %v155_v50 = vsel %vm151_vm9, nan, %v154_v49 }
  0x4a   :  { %v436_v52 = vpack.c.bf16 %v155_v50, %v155_v50 }
  0x4c   :  { %187 = vst.msk [vmem:[#allocation2 + $0x4] sm:$0xf] %vm185_vm10, %v436_v52 }
  0x53   :  { %v199_v56 = vld [vmem:[#allocation2 + $0x4] sm:$0xf] }
  0x54   :  { %201 = vst [vmem:[#allocation10] sm:$0xff] %v200_v53 }
  0x5b   :  { %v202_v57 = vld [vmem:[#allocation10] sm:$0x3] }
  0x5c   :  { %v203_v58 = vunpack.c.0.f8e4m3b11 %v202_v57 }
  0x5e   :  { %v207_v59 = vand.u32 2147483647, %v203_v58  ;;  %vm209_vm12 = vcmp.ne.f32.partialorder %v203_v58, %v203_v58  ;;  %v210_v60 = vmul.f32 16.0, %v203_v58 }
  0x60   :  { %vm535_vm13 = vcmp.gt.f32.partialorder %v207_v59, 29.0  ;;  %v211_v62 = vsel %vm209_vm12, -0.0, %v210_v60 }
  0x61   :  { %v212_v63 = vsel %vm535_vm13, nan, %v211_v62 }
  0x62   :  { %231 = vst [vmem:[#allocation11] sm:$0xff] %v200_v53 }
  0x69   :  { %v233_v0 = vld [vmem:[#allocation11 + $0x2] sm:$0x3] }
  0x6a   :  { %v234_v1 = vunpack.c.0.f8e4m3b11 %v233_v0 }
  0x6c   :  { %v238_v2 = vand.u32 2147483647, %v234_v1  ;;  %vm240_vm14 = vcmp.ne.f32.partialorder %v234_v1, %v234_v1  ;;  %v241_v3 = vmul.f32 16.0, %v234_v1 }
  0x6e   :  { %vm541_vm15 = vcmp.gt.f32.partialorder %v238_v2, 29.0  ;;  %v242_v5 = vsel %vm240_vm14, -0.0, %v241_v3 }
  0x6f   :  { %v243_v6 = vsel %vm541_vm15, nan, %v242_v5 }
  0x70   :  { %262 = vst [vmem:[#allocation12] sm:$0xff] %v200_v53 }
  0x77   :  { %v264_v7 = vld [vmem:[#allocation12 + $0x4] sm:$0x3] }
  0x78   :  { %v265_v8 = vunpack.c.0.f8e4m3b11 %v264_v7 }
  0x7a   :  { %v269_v9 = vand.u32 2147483647, %v265_v8  ;;  %vm271_vm0 = vcmp.ne.f32.partialorder %v265_v8, %v265_v8  ;;  %v272_v10 = vmul.f32 16.0, %v265_v8 }
  0x7c   :  { %vm270_vm1 = vcmp.gt.f32.partialorder %v269_v9, 29.0  ;;  %v273_v11 = vsel %vm271_vm0, -0.0, %v272_v10 }
  0x7d   :  { %v274_v12 = vsel %vm270_vm1, nan, %v273_v11 }
  0x7e   :  { %293 = vst [vmem:[#allocation13] sm:$0xff] %v200_v53  ;;  %440 = vmatprep.subr.bf16.mxu0 %v491_v54  ;;  %vm492_vm4 = vmmov 0   ;;  %v324_v20 = vpack.c.bf16 %v243_v6, %v212_v63  ;;  %v431_v21 = vcombine.low %v198_v55, %v199_v56  ;;  %v326_v22 = vld [vmem:[#allocation3] sm:$0xff]  ;;  %s433_s2 = sld [smem:[#allocation4 + $0x1]]  ;;  %v327_v26 = vld [vmem:[#allocation3 + $0x8] sm:$0xff]  ;;  %s493_s27 = smov [#allocation7]  }
  0x7f   :  { %444 = vmatprep.mubr.msk.bf16.mxu0 %vm492_vm4, %v491_v54  ;;  %v434_v32 = vld [vmem:[%s561_s3] ss:$0 sm:$0xff]  ;;  %s407_s28 = sshll.u32 %s493_s27, 4  ;;  %s408_s28 = int_to_ptr.vmem [resolvable:$true] %s407_s28 }
  0x80   :  { %s466_s29 = scalar_lea.vmem %s408_s28, 256  ;;  %p471_p6 = scmp.lt.s32.totalorder %s408_s28, %s408_s28 }
  0x81   :  { %p467_p5 = scmp.ne.s32.totalorder %s408_s28, %s466_s29  ;;  %p472_p7 = scmp.lt.s32.totalorder %s466_s29, %s466_s29 }
  0x83   :  { %p473_p8 = por %p472_p7, %p471_p6 }
  0x84   :  { %v388_v30 = vstv %s433_s2 }
  0x85   :  { %v295_v13 = vld [vmem:[#allocation13 + $0x6] sm:$0x3]  ;;  %p474_p9 = pnand %p473_p8, %p467_p5 }
  0x86   :  { %v296_v14 = vunpack.c.0.f8e4m3b11 %v295_v13 }
  0x88   :  { %v300_v15 = vand.u32 2147483647, %v296_v14  ;;  %vm302_vm2 = vcmp.ne.f32.partialorder %v296_v14, %v296_v14  ;;  %v303_v16 = vmul.f32 16.0, %v296_v14 }
  0x8a   :  { %vm301_vm3 = vcmp.gt.f32.partialorder %v300_v15, 29.0  ;;  %v304_v17 = vsel %vm302_vm2, -0.0, %v303_v16 }
  0x8b   :  { %v305_v18 = vsel %vm301_vm3, nan, %v304_v17 }
  0x8c   :  { %v325_v19 = vpack.c.bf16 %v305_v18, %v274_v12 }
  0x8e   :  { %441 = vmatpush3.bf16.msra.mxu0 %v325_v19 }
  0x8f   :  { %442 = vmatprep.subr.bf16.mxu0 %v491_v54 }
  0x92   :  { %443 = vmatpush3.bf16.msra.mxu0 %v324_v20 }
  0x95   :  { %445 = vmatmul.mubr.msk.bf16.vlgmr.msra.gmra.mxu0 %vm192_vm11, %v431_v21 }
 0x155   :  { %v371_v23 = vpop.f32.mrf.mxu0 }
 0x156   :  { %v378_v24 = vadd.f32 %v371_v23, %v326_v22 }
 0x157   :  { %v446_v25 = vpop.f32.mrf.mxu0 }
 0x158   :  { %380 = vst.msk [vmem:[#allocation3] sm:$0xff] %vm192_vm11, %v378_v24 }
 0x159   :  { %v374_v27 = vpop.f32.mrf.mxu0 }
 0x15a   :  { %v379_v28 = vadd.f32 %v374_v27, %v327_v26 }
 0x15b   :  { %v447_v29 = vpop.f32.mrf.mxu0 }
 0x15c   :  { %381 = vst.msk [vmem:[#allocation3 + $0x8] sm:$0xff] %vm192_vm11, %v379_v28 }
 0x15f   :  { %v385_v31 = vld [vmem:[#allocation3] sm:$0xff] }
 0x160   :  { %v389_v33 = vmul.f32 %v388_v30, %v385_v31 }
 0x162   :  { %v398_v34 = vadd.f32 %v434_v32, %v389_v33 }
 0x163   :  { %v386_v35 = vld [vmem:[#allocation3 + $0x8] sm:$0xff] }
 0x164   :  { %v390_v36 = vmul.f32 %v388_v30, %v386_v35  ;;  %400 = vst.msk [vmem:[#allocation7] sm:$0xff] %vm192_vm11, %v398_v34 }
 0x166   :  { %v399_v37 = vadd.f32 %v434_v32, %v390_v36 }
 0x168   :  { %401 = vst.msk [vmem:[#allocation7 + $0x8] sm:$0xff] %vm192_vm11, %v399_v37 }
 0x169   :  { %477 = shalt.err (!%p474_p9)
}
 0x16a   :  { %s494_s3 = smov 128   ;;  %s495_s30 = smov 8  }
 0x16b   :  { %413 = dma.vmem_to_hbm [thread:$0]  %s408_s28, 256, %s562_s4, [#allocation5], %s494_s3, %s494_s3, %s495_s30  }
 0x16c   :  { %488 = dma.done.wait [#allocation5], 256  }
 0x16d   :  { %489 = vsyncadd [#allocation5], 4294967040 }
 0x16e   :  { %417 = vsyncpa [#allocation5], 1 }
 0x16f   :  { %418 = vsyncpa [#allocation6], 1 }

// kernel: fp8_static_linear_quantizer.2
= control target key start
LH: loop header
LB: loop body
LE: loop exit
PB: predicated region body
PF: predicated region fallthrough
CT: control target
= control target key end

     0   :  { %6 = vsyncpa [#allocation3], 0  ;;  %s114_s0 = inlined_call_operand.hbm [shape: f32[16,32], index: 0, kind: input, shape index: {}]   ;;  %s115_s1 = inlined_call_operand.hbm [shape: f32[1,1], index: 1, kind: output, shape index: {}]  }
   0x1   :  { %7 = vsyncpa [#allocation4], 0  ;;  %s94_s6 = smov [#allocation2]  }
   0x2   :  { %s13_s7 = sshll.u32 %s94_s6, 4  ;;  %s14_s7 = int_to_ptr.vmem [resolvable:$true] %s13_s7 }
   0x3   :  { %s70_s8 = scalar_lea.vmem %s14_s7, 256  ;;  %p75_p1 = scmp.lt.s32.totalorder %s14_s7, %s14_s7 }
   0x4   :  { %p71_p0 = scmp.ne.s32.totalorder %s14_s7, %s70_s8  ;;  %p76_p2 = scmp.lt.s32.totalorder %s70_s8, %s70_s8 }
   0x6   :  { %p77_p3 = por %p76_p2, %p75_p1 }
   0x8   :  { %p78_p4 = pnand %p77_p3, %p71_p0 }
   0xa   :  { %81 = shalt.err (!%p78_p4)
}
   0xb   :  { %s95_s9 = smov 128   ;;  %s96_s10 = smov 8  }
   0xc   :  { %19 = dma.hbm_to_vmem [thread:$0]  %s114_s0, 256, %s14_s7, [#allocation3], %s95_s9, %s95_s9, %s96_s10  }
   0xd   :  { %90 = dma.done.wait [#allocation3], 256  }
   0xe   :  { %91 = vsyncadd [#allocation3], 4294967040  ;;  %v23_v0 = vld [vmem:[#allocation2] sm:$0xff]  ;;  %v24_v1 = vld [vmem:[#allocation2 + $0x8] sm:$0xff]  ;;  %vm27_vm0 = vcmask 261120   ;;  %s97_s13 = smov [#allocation5]  }
   0xf   :  { %v25_v2 = vand.u32 2147483647, %v23_v0  ;;  %v26_v3 = vand.u32 2147483647, %v24_v1 }
  0x11   :  { %v28_v4 = vsel %vm27_vm0, %v25_v2, -inf  ;;  %v29_v5 = vsel %vm27_vm0, %v26_v3, -inf }
  0x12   :  { %v30_v6 = vmax.f32 %v28_v4, %v29_v5 }
  0x14   :  { %31 = vmax.xlane.f32.xlu0 %v30_v6 }
  0x9d   :  { %v32_v7 = vpop.xlane.xlu0 %31 }
  0x9e   :  { %v33_v8 = vrot.slane %v32_v7, 4 }
  0xa0   :  { %v34_v9 = vmax.f32 %v32_v7, %v33_v8 }
  0xa2   :  { %v35_v10 = vrot.slane %v34_v9, 2 }
  0xa4   :  { %v36_v11 = vmax.f32 %v34_v9, %v35_v10 }
  0xa6   :  { %v37_v12 = vrot.slane %v36_v11, 1 }
  0xa8   :  { %v38_v13 = vmax.f32 %v36_v11, %v37_v12 }
  0xaa   :  { %56 = vpush %v38_v13 }
  0xdb   :  { %s57_s0 = spop %56 }
  0xdc   :  { %41 = sst [smem:[#allocation5]] %s57_s0 }
  0xdd   :  { %49 = dma.smem_to_hbm %s97_s13, 16, %s115_s1, [#allocation4]  }
  0xde   :  { %92 = dma.done.wait [#allocation4], 16  }
  0xdf   :  { %93 = vsyncadd [#allocation4], 4294967280 }
  0xe0   :  { %53 = sfence }
  0xe1   :  { %54 = vsyncpa [#allocation3], 1 }
  0xe2   :  { %55 = vsyncpa [#allocation4], 1 }

</bundles_post_ra>
